<compile_context>
chip_gen: v7x
topology: tpu7x:2x2x1
jax: 0.10.0
libtpu: 0.0.40
codegen_flags: <defaults>
</compile_context>

<pallas_src>
import functools

import jax
import jax.numpy as jnp
from jax.experimental import pallas as pl
from jax.experimental.pallas import tpu as pltpu

FEAT_PAD = 128   # lane-dense feature width (all feature dims zero-padded to this)
BIAS_ROWS = 8    # bias rows padded to a full sublane tile


def _sage_fused_kernel(x_ref, *refs, n_layers, n_dsts):
    """All SAGEConv('mean') layers fused for ONE batch element (one grid step).

    refs layout: adj_0..adj_{L-1}, w_stack, b_stack, o_ref
      x_ref   : (1, n_src0, FEAT_PAD)           bf16, zero-padded input node features
      adj_l   : (1, n_dst_l, n_src_l)           bf16, row-normalized dense block adjacency
      w_stack : (L, 2*FEAT_PAD, FEAT_PAD)       bf16, [W_self(pad); W_neigh(pad)] per layer
      b_stack : (L, BIAS_ROWS, FEAT_PAD)        f32, bias in row 0, zero-padded
      o_ref   : (1, n_dst_last, FEAT_PAD)       f32
    Weights/biases use a constant index_map, so they stay VMEM-resident across the grid.
    """
    adj_refs = refs[:n_layers]
    w_ref = refs[n_layers]
    b_ref = refs[n_layers + 1]
    o_ref = refs[n_layers + 2]

    h = x_ref[0]                              # (n_src0, FEAT_PAD) bf16
    h_f32 = None
    for l in range(n_layers):
        n_dst = n_dsts[l]
        adj = adj_refs[l][0]                  # (n_dst, n_src) bf16
        # Mean neighbor aggregation: bf16 operands, f32 accumulation on the MXU.
        h_neigh = jnp.dot(adj, h, preferred_element_type=jnp.float32)
        # Merged self/neighbor projection: single K = 2*FEAT_PAD MXU contraction.
        h_cat = jnp.concatenate([h[:n_dst, :], h_neigh.astype(jnp.bfloat16)], axis=-1)
        h_f32 = (jnp.dot(h_cat, w_ref[l], preferred_element_type=jnp.float32)
                 + b_ref[l][:1, :])
        if l != n_layers - 1:
            h_f32 = jnp.maximum(h_f32, 0.0)   # ReLU
            # TODO(synk): nn.Dropout is identity in eval/inference; no dropout applied.
        h = h_f32.astype(jnp.bfloat16)        # bf16 operands for the next layer's dots
    o_ref[0] = h_f32.astype(o_ref.dtype)


def _pad_last2(a, rows, cols):
    """Zero-pad the last two dims of an array up to (rows, cols)."""
    pad = [(0, 0)] * (a.ndim - 2) + [(0, rows - a.shape[-2]), (0, cols - a.shape[-1])]
    return jnp.pad(a, pad)


def sage_forward(blocks, x, params):
    """Batched SAGE.forward (eval): h = layer(block, h); ReLU between layers.

    blocks[l] : (B, n_dst_l, n_src_l) row-normalized dense adjacency (f32)
    x         : (B, n_src0, in_feats) input node features (f32)
    params[l] : dict(w_self (f_in,f_out), w_neigh (f_in,f_out), bias (1,f_out))
    Returns   : (B, n_dst_last, n_classes) f32
    """
    n_layers = len(params)
    B = x.shape[0]
    n_srcs = tuple(int(a.shape[2]) for a in blocks)
    n_dsts = tuple(int(a.shape[1]) for a in blocks)
    out_feats = params[-1]["w_self"].shape[1]

    # ---- host-side layout prep: lane-dense padding, packed weights, bf16 matmul operands
    x_p = _pad_last2(x.astype(jnp.float32), x.shape[1], FEAT_PAD).astype(jnp.bfloat16)
    adj_bf = [a.astype(jnp.bfloat16) for a in blocks]
    w_stack = jnp.stack([
        jnp.concatenate([
            _pad_last2(p["w_self"].astype(jnp.float32), FEAT_PAD, FEAT_PAD),
            _pad_last2(p["w_neigh"].astype(jnp.float32), FEAT_PAD, FEAT_PAD),
        ], axis=0)
        for p in params
    ]).astype(jnp.bfloat16)                                    # (L, 2*FEAT_PAD, FEAT_PAD)
    b_stack = jnp.stack([
        _pad_last2(p["bias"].astype(jnp.float32), BIAS_ROWS, FEAT_PAD) for p in params
    ])                                                         # (L, BIAS_ROWS, FEAT_PAD)

    kernel = functools.partial(_sage_fused_kernel, n_layers=n_layers, n_dsts=n_dsts)

    in_specs = (
        [pl.BlockSpec((1, x.shape[1], FEAT_PAD), lambda b: (b, 0, 0))]
        + [pl.BlockSpec((1, n_dsts[l], n_srcs[l]), lambda b: (b, 0, 0))
           for l in range(n_layers)]
        + [pl.BlockSpec((n_layers, 2 * FEAT_PAD, FEAT_PAD), lambda b: (0, 0, 0)),
           pl.BlockSpec((n_layers, BIAS_ROWS, FEAT_PAD), lambda b: (0, 0, 0))]
    )
    out_spec = pl.BlockSpec((1, n_dsts[-1], FEAT_PAD), lambda b: (b, 0, 0))

    out_p = pl.pallas_call(
        kernel,
        out_shape=jax.ShapeDtypeStruct((B, n_dsts[-1], FEAT_PAD), jnp.float32),
        grid_spec=pltpu.PrefetchScalarGridSpec(
            num_scalar_prefetch=0,
            grid=(B,),
            in_specs=in_specs,
            out_specs=out_spec,
        ),
        compiler_params=pltpu.CompilerParams(
            dimension_semantics=("parallel",),   # batch axis -> both TCs on v7x
        ),
    )(x_p, *adj_bf, w_stack, b_stack)
    # Strip the lane padding outside the kernel.
    return out_p[:, :, :out_feats]


if __name__ == "__main__":
    in_feats, n_hidden, n_classes, n_layers = 32, 32, 16, 3
    batch = 4                        # number of sampled-block problems per pallas_call
    # node counts per block: src -> dst shrinks layer by layer (sampled-block style);
    # multiples of 16 so bf16 dst slices stay sublane-tile aligned.
    node_counts = [64, 48, 32, 16]   # len == n_layers + 1

    key = jax.random.PRNGKey(0)
    k_x, k_adj, k_par = jax.random.split(key, 3)

    # input features for all source nodes of the first block, per batch element
    x = jax.random.normal(k_x, (batch, node_counts[0], in_feats), jnp.float32)

    # synthetic blocks: dense random adjacency, row-normalized ('mean' aggregation)
    adj_keys = jax.random.split(k_adj, n_layers)
    blocks = []
    for l in range(n_layers):
        a = jax.random.bernoulli(
            adj_keys[l], p=0.3,
            shape=(batch, node_counts[l + 1], node_counts[l])).astype(jnp.float32)
        deg = a.sum(axis=2, keepdims=True)
        blocks.append(jnp.where(deg > 0, a / jnp.maximum(deg, 1.0), 0.0))

    # layer parameter shapes follow SAGE.__init__:
    #   layer 0: in_feats -> n_hidden, middle: n_hidden -> n_hidden, last: n_hidden -> n_classes
    feat_dims = [in_feats] + [n_hidden] * (n_layers - 1) + [n_classes]
    par_keys = jax.random.split(k_par, n_layers)
    params = []
    for l in range(n_layers):
        k1, k2, k3 = jax.random.split(par_keys[l], 3)
        params.append({
            "w_self": 0.1 * jax.random.normal(k1, (feat_dims[l], feat_dims[l + 1]), jnp.float32),
            "w_neigh": 0.1 * jax.random.normal(k2, (feat_dims[l], feat_dims[l + 1]), jnp.float32),
            "bias": 0.1 * jax.random.normal(k3, (1, feat_dims[l + 1]), jnp.float32),
        })

    out = jax.jit(sage_forward)(blocks, x, params)
    out = jax.block_until_ready(out)
    assert out.shape == (batch, node_counts[-1], n_classes), out.shape

    # pure-JAX reference with matched bf16 operand rounding / f32 accumulation
    def ref_one(blocks_b, x_b):
        h = x_b.astype(jnp.bfloat16)
        o = None
        for l in range(n_layers):
            p = params[l]
            adj = blocks_b[l].astype(jnp.bfloat16)
            n_dst = adj.shape[0]
            hn = jnp.dot(adj, h, preferred_element_type=jnp.float32).astype(jnp.bfloat16)
            o = (jnp.dot(h[:n_dst], p["w_self"].astype(jnp.bfloat16),
                         preferred_element_type=jnp.float32)
                 + jnp.dot(hn, p["w_neigh"].astype(jnp.bfloat16),
                           preferred_element_type=jnp.float32)
                 + p["bias"])
            if l != n_layers - 1:
                o = jnp.maximum(o, 0.0)
            h = o.astype(jnp.bfloat16)
        return o

    ref = jnp.stack([ref_one([blk[b] for blk in blocks], x[b]) for b in range(batch)])
    assert jnp.allclose(out, ref, atol=2e-2, rtol=2e-2), \
        float(jnp.max(jnp.abs(out - ref)))

    print("KERNEL_OK")
</pallas_src>

<mosaic_0001>
module attributes {stable_mosaic.version = 11 : i64} {
  func.func @_sage_fused_kernel(%arg0: i32, %arg1: memref<1x64x128xbf16, #tpu.memory_space<vmem>>, %arg2: memref<1x48x64xbf16, #tpu.memory_space<vmem>>, %arg3: memref<1x32x48xbf16, #tpu.memory_space<vmem>>, %arg4: memref<1x16x32xbf16, #tpu.memory_space<vmem>>, %arg5: memref<3x256x128xbf16, #tpu.memory_space<vmem>>, %arg6: memref<3x8x128xf32, #tpu.memory_space<vmem>>, %arg7: memref<1x16x128xf32, #tpu.memory_space<vmem>>) attributes {dimension_semantics = [#tpu.dimension_semantics<parallel>], iteration_bounds = array<i64: 4>, scalar_prefetch = 0 : i64, scratch_operands = 0 : i64, tpu.core_type = #tpu.core_type<tc>, window_params = [{transform_indices = @transform_0, window_bounds = array<i64: 1, 64, 128>}, {transform_indices = @transform_1, window_bounds = array<i64: 1, 48, 64>}, {transform_indices = @transform_2, window_bounds = array<i64: 1, 32, 48>}, {transform_indices = @transform_3, window_bounds = array<i64: 1, 16, 32>}, {pipeline_mode = #tpu.pipeline_mode<synchronous>, transform_indices = @transform_4, window_bounds = array<i64: 3, 256, 128>}, {pipeline_mode = #tpu.pipeline_mode<synchronous>, transform_indices = @transform_5, window_bounds = array<i64: 3, 8, 128>}, {transform_indices = @transform_6, window_bounds = array<i64: 1, 16, 128>}]} {
    %c0 = arith.constant 0 : index
    %c0_0 = arith.constant 0 : index
    %c0_1 = arith.constant 0 : index
    %0 = vector.load %arg1[%c0, %c0_0, %c0_1] : memref<1x64x128xbf16, #tpu.memory_space<vmem>>, vector<1x64x128xbf16>
    %1 = vector.shape_cast %0 : vector<1x64x128xbf16> to vector<64x128xbf16>
    %c0_2 = arith.constant 0 : index
    %c0_3 = arith.constant 0 : index
    %c0_4 = arith.constant 0 : index
    %2 = vector.load %arg2[%c0_2, %c0_3, %c0_4] : memref<1x48x64xbf16, #tpu.memory_space<vmem>>, vector<1x48x64xbf16>
    %3 = vector.shape_cast %2 : vector<1x48x64xbf16> to vector<48x64xbf16>
    %cst = arith.constant dense<0.000000e+00> : vector<48x128xf32>
    %4 = tpu.matmul %3, %1, %cst {dimension_numbers = #tpu.dot_dimension_numbers<[1], [0], [0], [1], [0, 0, 1, 1], [], []>} : vector<48x64xbf16>, vector<64x128xbf16>, vector<48x128xf32> -> vector<48x128xf32>
    %5 = vector.extract_strided_slice %1 {offsets = [0, 0], sizes = [48, 128], strides = [1, 1]} : vector<64x128xbf16> to vector<48x128xbf16>
    %6 = arith.truncf %4 : vector<48x128xf32> to vector<48x128xbf16>
    %7 = tpu.concatenate %5, %6 in 1 : vector<48x128xbf16>, vector<48x128xbf16> -> vector<48x256xbf16>
    %c0_5 = arith.constant 0 : index
    %c0_6 = arith.constant 0 : index
    %c0_7 = arith.constant 0 : index
    %8 = vector.load %arg5[%c0_5, %c0_6, %c0_7] : memref<3x256x128xbf16, #tpu.memory_space<vmem>>, vector<1x256x128xbf16>
    %9 = vector.shape_cast %8 : vector<1x256x128xbf16> to vector<256x128xbf16>
    %cst_8 = arith.constant dense<0.000000e+00> : vector<48x128xf32>
    %10 = tpu.matmul %7, %9, %cst_8 {dimension_numbers = #tpu.dot_dimension_numbers<[1], [0], [0], [1], [0, 0, 1, 1], [], []>} : vector<48x256xbf16>, vector<256x128xbf16>, vector<48x128xf32> -> vector<48x128xf32>
    %c0_9 = arith.constant 0 : index
    %c0_10 = arith.constant 0 : index
    %c0_11 = arith.constant 0 : index
    %11 = vector.load %arg6[%c0_9, %c0_10, %c0_11] : memref<3x8x128xf32, #tpu.memory_space<vmem>>, vector<1x8x128xf32>
    %12 = vector.shape_cast %11 : vector<1x8x128xf32> to vector<8x128xf32>
    %13 = vector.extract_strided_slice %12 {offsets = [0, 0], sizes = [1, 128], strides = [1, 1]} : vector<8x128xf32> to vector<1x128xf32>
    %14 = vector.broadcast %13 : vector<1x128xf32> to vector<48x128xf32>
    %15 = arith.addf %10, %14 : vector<48x128xf32>
    %cst_12 = arith.constant 0.000000e+00 : f32
    %16 = vector.broadcast %cst_12 : f32 to vector<48x128xf32>
    %17 = arith.maximumf %15, %16 : vector<48x128xf32>
    %18 = arith.truncf %17 : vector<48x128xf32> to vector<48x128xbf16>
    %c0_13 = arith.constant 0 : index
    %c0_14 = arith.constant 0 : index
    %c0_15 = arith.constant 0 : index
    %19 = vector.load %arg3[%c0_13, %c0_14, %c0_15] : memref<1x32x48xbf16, #tpu.memory_space<vmem>>, vector<1x32x48xbf16>
    %20 = vector.shape_cast %19 : vector<1x32x48xbf16> to vector<32x48xbf16>
    %cst_16 = arith.constant dense<0.000000e+00> : vector<32x128xf32>
    %21 = tpu.matmul %20, %18, %cst_16 {dimension_numbers = #tpu.dot_dimension_numbers<[1], [0], [0], [1], [0, 0, 1, 1], [], []>} : vector<32x48xbf16>, vector<48x128xbf16>, vector<32x128xf32> -> vector<32x128xf32>
    %22 = vector.extract_strided_slice %18 {offsets = [0, 0], sizes = [32, 128], strides = [1, 1]} : vector<48x128xbf16> to vector<32x128xbf16>
    %23 = arith.truncf %21 : vector<32x128xf32> to vector<32x128xbf16>
    %24 = tpu.concatenate %22, %23 in 1 : vector<32x128xbf16>, vector<32x128xbf16> -> vector<32x256xbf16>
    %c1 = arith.constant 1 : index
    %c0_17 = arith.constant 0 : index
    %c0_18 = arith.constant 0 : index
    %25 = vector.load %arg5[%c1, %c0_17, %c0_18] : memref<3x256x128xbf16, #tpu.memory_space<vmem>>, vector<1x256x128xbf16>
    %26 = vector.shape_cast %25 : vector<1x256x128xbf16> to vector<256x128xbf16>
    %cst_19 = arith.constant dense<0.000000e+00> : vector<32x128xf32>
    %27 = tpu.matmul %24, %26, %cst_19 {dimension_numbers = #tpu.dot_dimension_numbers<[1], [0], [0], [1], [0, 0, 1, 1], [], []>} : vector<32x256xbf16>, vector<256x128xbf16>, vector<32x128xf32> -> vector<32x128xf32>
    %c1_20 = arith.constant 1 : index
    %c0_21 = arith.constant 0 : index
    %c0_22 = arith.constant 0 : index
    %28 = vector.load %arg6[%c1_20, %c0_21, %c0_22] : memref<3x8x128xf32, #tpu.memory_space<vmem>>, vector<1x8x128xf32>
    %29 = vector.shape_cast %28 : vector<1x8x128xf32> to vector<8x128xf32>
    %30 = vector.extract_strided_slice %29 {offsets = [0, 0], sizes = [1, 128], strides = [1, 1]} : vector<8x128xf32> to vector<1x128xf32>
    %31 = vector.broadcast %30 : vector<1x128xf32> to vector<32x128xf32>
    %32 = arith.addf %27, %31 : vector<32x128xf32>
    %cst_23 = arith.constant 0.000000e+00 : f32
    %33 = vector.broadcast %cst_23 : f32 to vector<32x128xf32>
    %34 = arith.maximumf %32, %33 : vector<32x128xf32>
    %35 = arith.truncf %34 : vector<32x128xf32> to vector<32x128xbf16>
    %c0_24 = arith.constant 0 : index
    %c0_25 = arith.constant 0 : index
    %c0_26 = arith.constant 0 : index
    %36 = vector.load %arg4[%c0_24, %c0_25, %c0_26] : memref<1x16x32xbf16, #tpu.memory_space<vmem>>, vector<1x16x32xbf16>
    %37 = vector.shape_cast %36 : vector<1x16x32xbf16> to vector<16x32xbf16>
    %cst_27 = arith.constant dense<0.000000e+00> : vector<16x128xf32>
    %38 = tpu.matmul %37, %35, %cst_27 {dimension_numbers = #tpu.dot_dimension_numbers<[1], [0], [0], [1], [0, 0, 1, 1], [], []>} : vector<16x32xbf16>, vector<32x128xbf16>, vector<16x128xf32> -> vector<16x128xf32>
    %39 = vector.extract_strided_slice %35 {offsets = [0, 0], sizes = [16, 128], strides = [1, 1]} : vector<32x128xbf16> to vector<16x128xbf16>
    %40 = arith.truncf %38 : vector<16x128xf32> to vector<16x128xbf16>
    %41 = tpu.concatenate %39, %40 in 1 : vector<16x128xbf16>, vector<16x128xbf16> -> vector<16x256xbf16>
    %c2 = arith.constant 2 : index
    %c0_28 = arith.constant 0 : index
    %c0_29 = arith.constant 0 : index
    %42 = vector.load %arg5[%c2, %c0_28, %c0_29] : memref<3x256x128xbf16, #tpu.memory_space<vmem>>, vector<1x256x128xbf16>
    %43 = vector.shape_cast %42 : vector<1x256x128xbf16> to vector<256x128xbf16>
    %cst_30 = arith.constant dense<0.000000e+00> : vector<16x128xf32>
    %44 = tpu.matmul %41, %43, %cst_30 {dimension_numbers = #tpu.dot_dimension_numbers<[1], [0], [0], [1], [0, 0, 1, 1], [], []>} : vector<16x256xbf16>, vector<256x128xbf16>, vector<16x128xf32> -> vector<16x128xf32>
    %c2_31 = arith.constant 2 : index
    %c0_32 = arith.constant 0 : index
    %c0_33 = arith.constant 0 : index
    %45 = vector.load %arg6[%c2_31, %c0_32, %c0_33] : memref<3x8x128xf32, #tpu.memory_space<vmem>>, vector<1x8x128xf32>
    %46 = vector.shape_cast %45 : vector<1x8x128xf32> to vector<8x128xf32>
    %47 = vector.extract_strided_slice %46 {offsets = [0, 0], sizes = [1, 128], strides = [1, 1]} : vector<8x128xf32> to vector<1x128xf32>
    %48 = vector.broadcast %47 : vector<1x128xf32> to vector<16x128xf32>
    %49 = arith.addf %44, %48 : vector<16x128xf32>
    %c0_34 = arith.constant 0 : index
    %c0_35 = arith.constant 0 : index
    %c0_36 = arith.constant 0 : index
    %50 = vector.load %arg7[%c0_34, %c0_35, %c0_36] : memref<1x16x128xf32, #tpu.memory_space<vmem>>, vector<1x16x128xf32>
    %51 = vector.shape_cast %50 : vector<1x16x128xf32> to vector<16x128xf32>
    %52 = vector.shape_cast %49 : vector<16x128xf32> to vector<1x16x128xf32>
    tpu.vector_store %arg7[%c0_34, %c0_35, %c0_36], %52 {strides = array<i32>} : memref<1x16x128xf32, #tpu.memory_space<vmem>>, vector<1x16x128xf32>,
    return
  }
  func.func @transform_0(%arg0: i32) -> (i32, i32, i32) {
    %c0_i32 = arith.constant 0 : i32
    %c0_i32_0 = arith.constant 0 : i32
    %c0_i32_1 = arith.constant 0 : i32
    return %arg0, %c0_i32, %c0_i32_0 : i32, i32, i32
  }
  func.func @transform_1(%arg0: i32) -> (i32, i32, i32) {
    %c0_i32 = arith.constant 0 : i32
    %c0_i32_0 = arith.constant 0 : i32
    %c0_i32_1 = arith.constant 0 : i32
    return %arg0, %c0_i32, %c0_i32_0 : i32, i32, i32
  }
  func.func @transform_2(%arg0: i32) -> (i32, i32, i32) {
    %c0_i32 = arith.constant 0 : i32
    %c0_i32_0 = arith.constant 0 : i32
    %c0_i32_1 = arith.constant 0 : i32
    return %arg0, %c0_i32, %c0_i32_0 : i32, i32, i32
  }
  func.func @transform_3(%arg0: i32) -> (i32, i32, i32) {
    %c0_i32 = arith.constant 0 : i32
    %c0_i32_0 = arith.constant 0 : i32
    %c0_i32_1 = arith.constant 0 : i32
    return %arg0, %c0_i32, %c0_i32_0 : i32, i32, i32
  }
  func.func @transform_4(%arg0: i32) -> (i32, i32, i32) {
    %c0_i32 = arith.constant 0 : i32
    %c0_i32_0 = arith.constant 0 : i32
    %c0_i32_1 = arith.constant 0 : i32
    %c0_i32_2 = arith.constant 0 : i32
    return %c0_i32, %c0_i32_0, %c0_i32_1 : i32, i32, i32
  }
  func.func @transform_5(%arg0: i32) -> (i32, i32, i32) {
    %c0_i32 = arith.constant 0 : i32
    %c0_i32_0 = arith.constant 0 : i32
    %c0_i32_1 = arith.constant 0 : i32
    %c0_i32_2 = arith.constant 0 : i32
    return %c0_i32, %c0_i32_0, %c0_i32_1 : i32, i32, i32
  }
  func.func @transform_6(%arg0: i32) -> (i32, i32, i32) {
    %c0_i32 = arith.constant 0 : i32
    %c0_i32_0 = arith.constant 0 : i32
    %c0_i32_1 = arith.constant 0 : i32
    return %arg0, %c0_i32, %c0_i32_0 : i32, i32, i32
  }
}

</mosaic_0001>

<bundles_post_ra>
// kernel: sage_forward.1
= control target key start
LH: loop header
LB: loop body
LE: loop exit
PB: predicated region body
PF: predicated region fallthrough
CT: control target
= control target key end

     0   :  { %11 = vsyncpa [#allocation3], 0  ;;  %s2036_s0 = inlined_call_operand.vmem [shape: bf16[4,64,128], index: 0, kind: input, shape index: {}]   ;;  %s2037_s1 = inlined_call_operand.vmem [shape: bf16[4,48,64], index: 1, kind: input, shape index: {}]   ;;  %s2038_s2 = inlined_call_operand.vmem [shape: bf16[4,32,48], index: 2, kind: input, shape index: {}]   ;;  %s2039_s3 = inlined_call_operand.vmem [shape: bf16[4,16,32], index: 3, kind: input, shape index: {}]   ;;  %s2040_s4 = inlined_call_operand.vmem [shape: bf16[3,256,128], index: 4, kind: input, shape index: {}]   ;;  %s2041_s5 = inlined_call_operand.vmem [shape: f32[3,8,128], index: 5, kind: input, shape index: {}]   ;;  %s2042_s6 = inlined_call_operand.hbm [shape: f32[4,16,128], index: 6, kind: output, shape index: {}]  }
   0x1   :  { %13 = vsyncpa [#allocation3 + $0x1], 0  ;;  %s1732_s21 = smov 0   ;;  %s1734_s22 = smov 0  }
   0x2   :  { %s1736_s23 = smov 0   ;;  %s1738_s24 = smov 0  }
   0x3 LB: > { %s1753_s25 = sadd.s32 4294967295, %s1690_s24   ;;  %s1238_s26 = sadd.s32 4294967294, %s1690_s24   ;;  %s1690_s24 = sphi %s1738_s24, %s2048_s24   ;;  %s1686_s23 = sphi %s1736_s23, %s2047_s23   ;;  %s1682_s22 = sphi %s1734_s22, %s2046_s22   ;;  %s1678_s21 = sphi %s1732_s21, %s2045_s21  }
   0x4   : > { %s1757_s27 = sadd.s32 1, %s1690_s24   ;;  %s172_s28 = sadd.s32 1, %s1686_s23 }
   0x5   : > { %s169_s29 = ssub.s32 %s1690_s24, %s1757_s27  ;;  %p182_p0 = scmp.ne.s32.totalorder %s1686_s23, %s1682_s22 }
   0x6   : > { %p170_p1 = scmp.eq.s32.totalorder %s169_s29, 0  ;;  %p183_p2 = scmp.eq.s32.totalorder %s1753_s25, 3 }
   0x7   : > { %p188_p3 = scmp.ne.s32.totalorder %s1682_s22, %s1678_s21  ;;  %p189_p4 = scmp.eq.s32.totalorder %s1238_s26, 3 }
   0x8   : > { %s1768_s30 = scalar_select %p170_p1, %s1686_s23, %s172_s28  }
   0x9   : > { %p1770_p5 = por %p183_p2, %p182_p0  ;;  %p1774_p6 = por %p189_p4, %p188_p3 }
   0xa   : > { %p1241_p7 = scmp.ge.s32.totalorder %s1690_s24, 1  ;;  %p245_p8 = scmp.lt.s32.totalorder %s1690_s24, 5 }
   0xc   : > { %p246_p9 = pnand %p1241_p7, %p245_p8 }
   0xd   : > { %p290_p10 = scmp.lt.s32.totalorder (!%p246_p9), %s1753_s25, 3  ;;  %v1692_v0 = vmov (!%p246_p9), 0.0   ;;  %vm1693_vm0 = vmmov (!%p246_p9), 0   ;;  %v1577_v1 = vld [vmem:[%s2040_s4 + $0x40] sm:$0xff] (!%p246_p9)   ;;  %v1579_v3 = vld [vmem:[%s2040_s4 + $0x48] sm:$0xff] (!%p246_p9)   ;;  %v1581_v5 = vld [vmem:[%s2040_s4 + $0x50] sm:$0xff] (!%p246_p9)   ;;  %v467_v53 = vlaneseq (!%p246_p9) }
   0xe   : > { %249 = sbr.rel (%p246_p9) target bundleno = 1404 (0x57c), region = 44  ;;  %1488 = vmatprep.subr.bf16.mxu0 (!%p246_p9), %v1692_v0  ;;  %1496 = vmatprep.mubr.msk.bf16.mxu0 (!%p246_p9), %vm1693_vm0, %v1692_v0  ;;  %v1578_v2 = vld [vmem:[%s2040_s4] sm:$0xff] (!%p246_p9)   ;;  %v1580_v4 = vld [vmem:[%s2040_s4 + $0x8] sm:$0xff] (!%p246_p9)   ;;  %v1582_v9 = vld [vmem:[%s2040_s4 + $0x10] sm:$0xff] (!%p246_p9)   ;;  %vm364_vm1 = vcmask (!%p246_p9), 523264   ;;  %vm647_vm2 = vcmask (!%p246_p9), 392192  }
   0xf   : > { %1396 = vmatprep.subr.bf16.mxu1 (!%p246_p9), %v1577_v1  ;;  %v1583_v11 = vld [vmem:[%s2040_s4 + $0x58] sm:$0xff] (!%p246_p9)   ;;  %v1585_v13 = vld [vmem:[%s2040_s4 + $0x60] sm:$0xff] (!%p246_p9)   ;;  %v1587_v16 = vld [vmem:[%s2040_s4 + $0x68] sm:$0xff] (!%p246_p9)   ;;  %v468_v54 = vshrl.u32 (!%p246_p9), %v467_v53, 7  ;;  %vm902_vm3 = vcmask (!%p246_p9), 261120   ;;  %s287_s14 = sand.u32 (!%p246_p9), 1, %s1682_s22  }
  0x10   : > { %1397 = vmatpush3.bf16.msra.mxu1 (!%p246_p9), %v1578_v2  ;;  %v1584_v12 = vld [vmem:[%s2040_s4 + $0x18] sm:$0xff] (!%p246_p9)   ;;  %v1586_v15 = vld [vmem:[%s2040_s4 + $0x20] sm:$0xff] (!%p246_p9)   ;;  %v1588_v17 = vld [vmem:[%s2040_s4 + $0x28] sm:$0xff] (!%p246_p9)   ;;  %s1242_s15 = sshll.u32 (!%p246_p9), %s287_s14, 4 }
  0x11   : > { %1398 = vmatprep.subr.bf16.mxu1 (!%p246_p9), %v1579_v3  ;;  %v1589_v18 = vld [vmem:[%s2040_s4 + $0x70] sm:$0xff] (!%p246_p9)   ;;  %v1591_v22 = vld [vmem:[%s2040_s4 + $0x78] sm:$0xff] (!%p246_p9)   ;;  %v1595_v40 = vld [vmem:[%s2040_s4 + $0xc0] sm:$0xff] (!%p246_p9)   ;;  %v1905_v55 = vsub.s32 (!%p246_p9), 0, %v468_v54  ;;  %s289_s19 = scalar_lea.vmem (!%p246_p9), [#allocation2], %s1242_s15 }
  0x12   : > { %v1590_v20 = vld [vmem:[%s2040_s4 + $0x30] sm:$0xff] (!%p246_p9)   ;;  %v1592_v23 = vld [vmem:[%s2040_s4 + $0x38] sm:$0xff] (!%p246_p9)   ;;  %v1596_v41 = vld [vmem:[%s2040_s4 + $0x80] sm:$0xff] (!%p246_p9)   ;;  %s1140_s20 = sshll.u32 (!%p246_p9), %s289_s19, 4  ;;  %s1988_s20 = int_to_ptr.vmem [resolvable:$true] %s1140_s20 }
  0x13   : > { %v1597_v42 = vld [vmem:[%s2040_s4 + $0xc8] sm:$0xff] (!%p246_p9)   ;;  %v1599_v44 = vld [vmem:[%s2040_s4 + $0xd0] sm:$0xff] (!%p246_p9)   ;;  %v1601_v46 = vld [vmem:[%s2040_s4 + $0xd8] sm:$0xff] (!%p246_p9)   ;;  %s1628_s29 = scalar_lea.vmem (!%p246_p9), %s1988_s20, 256 }
  0x14   : > { %1399 = vmatpush3.bf16.msra.mxu1 (!%p246_p9), %v1580_v4  ;;  %v1598_v43 = vld [vmem:[%s2040_s4 + $0x88] sm:$0xff] (!%p246_p9)   ;;  %v1600_v45 = vld [vmem:[%s2040_s4 + $0x90] sm:$0xff] (!%p246_p9)   ;;  %v1602_v47 = vld [vmem:[%s2040_s4 + $0x98] sm:$0xff] (!%p246_p9)   ;;  %p1629_p11 = scmp.ne.s32.totalorder (!%p246_p9), %s1988_s20, %s1628_s29 }
  0x15   : > { %s1788_s11 = scalar_select %p290_p10, %s1753_s25, 3  ;;  %1400 = vmatprep.subr.bf16.mxu1 %v1581_v5  ;;  %v1603_v48 = vld [vmem:[%s2040_s4 + $0xe0] sm:$0xff]   ;;  %v1605_v50 = vld [vmem:[%s2040_s4 + $0xe8] sm:$0xff]   ;;  %v1607_v52 = vld [vmem:[%s2040_s4 + $0xf0] sm:$0xff]  }
  0x16   : > { %v1604_v49 = vld [vmem:[%s2040_s4 + $0xa0] sm:$0xff]   ;;  %v1606_v51 = vld [vmem:[%s2040_s4 + $0xa8] sm:$0xff]   ;;  %p1630_p12 = pnand %p1629_p11, %p1770_p5 }
  0x17   : > { %s1385_s16 = sshll.u32 %s1788_s11, 5  ;;  %s1526_s17 = smul.u32 24, %s1788_s11  ;;  %v466_v56 = vld [vmem:[%s2041_s5] sm:$0xff] }
  0x18   : > { %s294_s9 = scalar_lea.vmem %s2036_s0, %s1385_s16  ;;  %1401 = vmatpush3.bf16.msra.mxu1 %v1582_v9  ;;  %v470_v58 = vrot.slane %v466_v56, %v1905_v55  ;;  %p1631_p13 = pneg %p1630_p12 }
  0x19   : > { %v1570_v6 = vld [vmem:[%s294_s9] sm:$0xff]   ;;  %v1571_v7 = vld [vmem:[%s294_s9 + $0x8] sm:$0xff]   ;;  %s1811_s13 = scalar_lea.vmem %s2037_s1, %s1526_s17  ;;  %v1572_v8 = vld [vmem:[%s294_s9 + $0x10] sm:$0xff]   ;;  %1402 = vmatprep.subr.bf16.mxu1 %v1583_v11  ;;  %s1387_s17 = sshll.u32 %s1788_s11, 3 }
  0x1a   : > { %1489 = vmatpush3.bf16.msra.mxu0 %v1570_v6  ;;  %v1573_v10 = vld [vmem:[%s294_s9 + $0x18] sm:$0xff]   ;;  %v1574_v14 = vld [vmem:[%s1811_s13] sm:$0xff]   ;;  %v1575_v19 = vld [vmem:[%s1811_s13 + $0x8] sm:$0xff]  }
  0x1b   : > { %1490 = vmatprep.subr.bf16.mxu0 %v1692_v0  ;;  %v1576_v21 = vld [vmem:[%s1811_s13 + $0x10] sm:$0xff]   ;;  %s1386_s13 = sshll.u32 %s1788_s11, 4 }
  0x1c   : > { %1403 = vmatpush3.bf16.msra.mxu1 %v1584_v12  ;;  %s1862_s10 = scalar_lea.vmem %s2038_s2, %s1386_s13  ;;  %s309_s13 = scalar_lea.vmem %s2039_s3, %s1387_s17 }
  0x1d   : > { %1404 = vmatprep.subr.bf16.mxu1 %v1585_v13  ;;  %v1593_v39 = vld [vmem:[%s1862_s10] sm:$0xff]  }
  0x1e   : > { %1491 = vmatpush3.bf16.msra.mxu0 %v1571_v7 }
  0x1f   : > { %1492 = vmatprep.subr.bf16.mxu0 %v1692_v0 }
  0x20   : > { %1405 = vmatpush3.bf16.msra.mxu1 %v1586_v15 }
  0x21   : > { %1406 = vmatprep.subr.bf16.mxu1 %v1587_v16 }
  0x22   : > { %1493 = vmatpush3.bf16.msra.mxu0 %v1572_v8 }
  0x23   : > { %1494 = vmatprep.subr.bf16.mxu0 %v1692_v0 }
  0x24   : > { %1407 = vmatpush3.bf16.msra.mxu1 %v1588_v17 }
  0x25   : > { %1408 = vmatprep.subr.bf16.mxu1 %v1589_v18 }
  0x26   : > { %1495 = vmatpush3.bf16.msra.mxu0 %v1573_v10 }
  0x28   : > { %1409 = vmatpush3.bf16.msra.mxu1 %v1590_v20 }
  0x29   : > { %1497 = vmatmul.mubr.msk.bf16.vlgmr.msra.gmra.mrb[0].mxu0 %vm364_vm1, %v1574_v14  ;;  %1410 = vmatprep.subr.bf16.mxu1 %v1591_v22 }
  0x2a   : > { %1500 = vmatprep.mubr.msk.bf16.mxu0 %vm1693_vm0, %v1692_v0 }
  0x2c   : > { %1411 = vmatpush3.bf16.msra.mxu1 %v1592_v23 }
  0x2d   : > { %1435 = vmatprep.subr.bf16.mxu1 %v1595_v40 }
  0x31   : > { %1501 = vmatmul.mubr.msk.bf16.gmra.mrb[4].mxu0 %vm364_vm1, %v1575_v19 }
  0x32   : > { %1504 = vmatprep.mubr.msk.bf16.mxu0 %vm1693_vm0, %v1692_v0 }
  0x39   : > { %1505 = vmatmul.mubr.msk.bf16.gmra.mrb[8].mxu0 %vm364_vm1, %v1576_v21 }
  0x3a   : > { %1514 = vmatprep.mubr.msk.bf16.mxu0 %vm647_vm2, %v1593_v39 }
  0xfc   : > { %v408_v24 = vpop.f32.mrb[0].mxu0 }
  0xfd   : > { %v1498_v25 = vpop.f32.mrb[1].mxu0 }
  0xfe   : > { %v411_v26 = vpop.f32.mrb[2].mxu0 }
  0xff   : > { %v1499_v27 = vpop.f32.mrb[3].mxu0  ;;  %v431_v28 = vpack.c.bf16 %v411_v26, %v408_v24 }
 0x101   : > { %599 = vmatprep.mubr.bf16.mxu1 %v431_v28  ;;  %v1594_v28 = vld [vmem:[%s1862_s10 + $0x8] sm:$0xff]   ;;  %s1388_s10 = sshll.u32 %s1753_s25, 8  ;;  %s1694_s25 = smov [#allocation2]  }
 0x102   : > { %600 = vmatmul.mubr.bf16.vlgmr.msra.gmra.mrb[0].mxu1 %v1570_v6  ;;  %s1993_s28 = scalar_lea.hbm %s2042_s6, %s1388_s10  ;;  %s1632_s9 = sshll.u32 %s1694_s25, 4  ;;  %s1633_s9 = int_to_ptr.vmem [resolvable:$false] %s1632_s9 }
 0x103   : > { %1436 = vmatpush3.bf16.msra.mxu1 %v1596_v41  ;;  %s1634_s11 = scalar_lea.vmem %s1633_s9, 512  ;;  %p1635_p0 = scmp.lt.s32.totalorder %s1988_s20, %s1633_s9 }
 0x104   : > { %v416_v29 = vpop.f32.mrb[4].mxu0  ;;  %1437 = vmatprep.subr.bf16.mxu1 %v1597_v42  ;;  %p1636_p1 = scmp.lt.s32.totalorder %s1634_s11, %s1628_s29 }
 0x105   : > { %v1502_v30 = vpop.f32.mrb[5].mxu0 }
 0x106   : > { %v419_v31 = vpop.f32.mrb[6].mxu0  ;;  %v1609_v30 = vld [vmem:[%s2040_s4 + $0xf8] sm:$0xff]   ;;  %p1637_p2 = por %p1636_p1, %p1635_p0 }
 0x107   : > { %v432_v32 = vpack.c.bf16 %v419_v31, %v416_v29  ;;  %v1503_v33 = vpop.f32.mrb[7].mxu0  ;;  %1438 = vmatpush3.bf16.msra.mxu1 %v1598_v43  ;;  %v1608_v29 = vld [vmem:[%s2040_s4 + $0xb0] sm:$0xff]   ;;  %v1610_v31 = vld [vmem:[%s2040_s4 + $0xb8] sm:$0xff]  }
 0x108   : > { %1439 = vmatprep.subr.bf16.mxu1 %v1599_v44  ;;  %p1638_p3 = pnand %p1637_p2, %p1631_p13 }
 0x109   : > { %607 = vmatprep.mubr.bf16.mxu1 %v432_v32 }
 0x10a   : > { %608 = vmatmul.mubr.bf16.gmra.mrb[4].mxu1 %v1571_v7 }
 0x10b   : > { %1440 = vmatpush3.bf16.msra.mxu1 %v1600_v45 }
 0x10c   : > { %v424_v34 = vpop.f32.mrb[8].mxu0  ;;  %1441 = vmatprep.subr.bf16.mxu1 %v1601_v46 }
 0x10d   : > { %v1506_v35 = vpop.f32.mrb[9].mxu0 }
 0x10e   : > { %v427_v36 = vpop.f32.mrb[10].mxu0 }
 0x10f   : > { %v433_v37 = vpack.c.bf16 %v427_v36, %v424_v34  ;;  %v1507_v38 = vpop.f32.mrb[11].mxu0  ;;  %1442 = vmatpush3.bf16.msra.mxu1 %v1602_v47 }
 0x110   : > { %1443 = vmatprep.subr.bf16.mxu1 %v1603_v48  ;;  %v1312_v38 = vld [vmem:[%s2041_s5 + $0x8] sm:$0xff] }
 0x111   : > { %615 = vmatprep.mubr.bf16.mxu1 %v433_v37  ;;  %v743_v40 = vrot.slane %v1312_v38, %v1905_v55 }
 0x112   : > { %616 = vmatmul.mubr.bf16.gmra.mrb[8].mxu1 %v1572_v8 }
 0x113   : > { %1444 = vmatpush3.bf16.msra.mxu1 %v1604_v49 }
 0x114   : > { %1445 = vmatprep.subr.bf16.mxu1 %v1605_v50 }
 0x117   : > { %1446 = vmatpush3.bf16.msra.mxu1 %v1606_v51 }
 0x118   : > { %1447 = vmatprep.subr.bf16.mxu1 %v1607_v52 }
 0x11b   : > { %1448 = vmatpush3.bf16.msra.mxu1 %v1608_v29 }
 0x11c   : > { %1449 = vmatprep.subr.bf16.mxu1 %v1609_v30 }
 0x11f   : > { %1450 = vmatpush3.bf16.msra.mxu1 %v1610_v31 }
 0x1d5   : > { %v1412_v57 = vpop.f32.mrb[0].mxu1 }
 0x1d6   : > { %v1413_v59 = vpop.f32.mrb[1].mxu1 }
 0x1d7   : > { %v1414_v60 = vadd.f32 %v1413_v59, %v1412_v57  ;;  %v1415_v61 = vpop.f32.mrb[2].mxu1 }
 0x1d8   : > { %v1416_v62 = vpop.f32.mrb[3].mxu1 }
 0x1d9   : > { %v602_v63 = vadd.f32 %v1414_v60, %v470_v58  ;;  %v1417_v1 = vadd.f32 %v1416_v62, %v1415_v61  ;;  %v1612_v62 = vld [vmem:[%s2040_s4 + $0x140] sm:$0xff]  }
 0x1db   : > { %v605_v2 = vadd.f32 %v1417_v1, %v470_v58  ;;  %v624_v3 = vmax.f32 %v602_v63, 0.0  ;;  %v1611_v1 = vld [vmem:[%s309_s13] sm:$0xff]   ;;  %s1995_s13 = scalar_lea.sflag [#allocation3], %s287_s14 }
 0x1dd   : > { %v625_v4 = vmax.f32 %v605_v2, 0.0  ;;  %v1418_v5 = vpop.f32.mrb[4].mxu1  ;;  %v1613_v2 = vld [vmem:[%s2040_s4 + $0x100] sm:$0xff]  }
 0x1de   : > { %v1419_v6 = vpop.f32.mrb[5].mxu1 }
 0x1df   : > { %v1420_v7 = vadd.f32 %v1419_v6, %v1418_v5  ;;  %v1421_v8 = vpop.f32.mrb[6].mxu1  ;;  %v630_v9 = vpack.c.bf16 %v625_v4, %v624_v3  ;;  %v1615_v3 = vld [vmem:[%s2040_s4 + $0x108] sm:$0xff]   ;;  %v1616_v4 = vld [vmem:[%s2040_s4 + $0x150] sm:$0xff]   ;;  %v1618_v6 = vld [vmem:[%s2040_s4 + $0x158] sm:$0xff]  }
 0x1e0   : > { %v1422_v10 = vpop.f32.mrb[7].mxu1  ;;  %v1617_v5 = vld [vmem:[%s2040_s4 + $0x110] sm:$0xff]  }
 0x1e1   : > { %v610_v11 = vadd.f32 %v1420_v7, %v470_v58  ;;  %v1423_v12 = vadd.f32 %v1422_v10, %v1421_v8  ;;  %1508 = vmatprep.subr.bf16.mxu0 %v630_v9  ;;  %v1619_v7 = vld [vmem:[%s2040_s4 + $0x118] sm:$0xff]   ;;  %v1620_v8 = vld [vmem:[%s2040_s4 + $0x160] sm:$0xff]   ;;  %v1622_v10 = vld [vmem:[%s2040_s4 + $0x168] sm:$0xff]  }
 0x1e2   : > { %1509 = vmatpush3.bf16.msra.mxu0 %v630_v9 }
 0x1e3   : > { %v613_v13 = vadd.f32 %v1423_v12, %v470_v58  ;;  %v626_v14 = vmax.f32 %v610_v11, 0.0  ;;  %v1623_v11 = vld [vmem:[%s2040_s4 + $0x128] sm:$0xff]   ;;  %v1624_v12 = vld [vmem:[%s2040_s4 + $0x170] sm:$0xff]  }
 0x1e5   : > { %v627_v15 = vmax.f32 %v613_v13, 0.0  ;;  %v1424_v16 = vpop.f32.mrb[8].mxu1  ;;  %v1625_v13 = vld [vmem:[%s2040_s4 + $0x130] sm:$0xff]  }
 0x1e6   : > { %v1425_v17 = vpop.f32.mrb[9].mxu1 }
 0x1e7   : > { %v1426_v18 = vadd.f32 %v1425_v17, %v1424_v16  ;;  %v1427_v19 = vpop.f32.mrb[10].mxu1  ;;  %v631_v20 = vpack.c.bf16 %v627_v15, %v626_v14  ;;  %v1626_v14 = vld [vmem:[%s2040_s4 + $0x178] sm:$0xff]  }
 0x1e8   : > { %v1428_v21 = vpop.f32.mrb[11].mxu1  ;;  %v1627_v15 = vld [vmem:[%s2040_s4 + $0x138] sm:$0xff]  }
 0x1e9   : > { %v618_v22 = vadd.f32 %v1426_v18, %v470_v58  ;;  %v1429_v23 = vadd.f32 %v1428_v21, %v1427_v19  ;;  %1510 = vmatprep.subr.bf16.mxu0 %v631_v20  ;;  %v1363_v21 = vld [vmem:[%s2041_s5 + $0x10] sm:$0xff] }
 0x1ea   : > { %1511 = vmatpush3.bf16.msra.mxu0 %v631_v20 }
 0x1eb   : > { %v621_v24 = vadd.f32 %v1429_v23, %v470_v58  ;;  %v628_v25 = vmax.f32 %v618_v22, 0.0  ;;  %v986_v23 = vrot.slane %v1363_v21, %v1905_v55 }
 0x1ed   : > { %v629_v26 = vmax.f32 %v621_v24, 0.0 }
 0x1ef   : > { %v632_v27 = vpack.c.bf16 %v629_v26, %v628_v25 }
 0x1f1   : > { %1512 = vmatprep.subr.bf16.mxu0 %v632_v27 }
 0x1f2   : > { %1513 = vmatpush3.bf16.msra.mxu0 %v632_v27 }
 0x1f3   : > { %1518 = vmatprep.subr.bf16.mxu0 %v1692_v0 }
 0x1f5   : > { %1515 = vmatmul.mubr.msk.bf16.vlgmr.msra.gmra.mrb[12].mxu0 %vm647_vm2, %v1594_v28 }
 0x1f6   : > { %1522 = vmatprep.mubr.msk.bf16.mxu0 %vm1693_vm0, %v1692_v0 }
 0x2c8   : > { %v1516_v32 = vpop.f32.mrb[12].mxu0 }
 0x2c9   : > { %v688_v33 = vpop.f32.mrb[13].mxu0 }
 0x2ca   : > { %v1517_v34 = vpop.f32.mrb[14].mxu0 }
 0x2cb   : > { %v704_v35 = vpack.c.bf16 %v1517_v34, %v1516_v32  ;;  %v691_v36 = vpop.f32.mrb[15].mxu0 }
 0x2cc   : > { %v703_v37 = vpack.c.bf16 %v691_v36, %v688_v33 }
 0x2ce   : > { %872 = vmatprep.mubr.bf16.mxu1 %v703_v37 }
 0x2cf   : > { %873 = vmatmul.mubr.bf16.vlgmr.msra.gmra.mrb[12].mxu1 %v630_v9  ;;  %v1621_v9 = vld [vmem:[%s2040_s4 + $0x120] sm:$0xff]  }
 0x2d0   : > { %880 = vmatprep.mubr.bf16.mxu1 %v704_v35 }
 0x2d7   : > { %881 = vmatmul.mubr.bf16.gmra.mrb[16].mxu1 %v631_v20 }
 0x3a2   : > { %v1451_v39 = vpop.f32.mrb[12].mxu1 }
 0x3a3   : > { %v1452_v41 = vpop.f32.mrb[13].mxu1 }
 0x3a4   : > { %v1453_v42 = vadd.f32 %v1452_v41, %v1451_v39  ;;  %v1454_v43 = vpop.f32.mrb[14].mxu1 }
 0x3a5   : > { %v1455_v44 = vpop.f32.mrb[15].mxu1 }
 0x3a6   : > { %v875_v45 = vadd.f32 %v1453_v42, %v743_v40  ;;  %v1456_v46 = vadd.f32 %v1455_v44, %v1454_v43 }
 0x3a8   : > { %v878_v47 = vadd.f32 %v1456_v46, %v743_v40  ;;  %v889_v48 = vmax.f32 %v875_v45, 0.0 }
 0x3aa   : > { %v890_v49 = vmax.f32 %v878_v47, 0.0  ;;  %v1457_v50 = vpop.f32.mrb[16].mxu1 }
 0x3ab   : > { %v1458_v51 = vpop.f32.mrb[17].mxu1 }
 0x3ac   : > { %v893_v52 = vpack.c.bf16 %v890_v49, %v889_v48  ;;  %v1459_v53 = vadd.f32 %v1458_v51, %v1457_v50  ;;  %v1460_v54 = vpop.f32.mrb[18].mxu1 }
 0x3ad   : > { %v1461_v56 = vpop.f32.mrb[19].mxu1 }
 0x3ae   : > { %v883_v57 = vadd.f32 %v1459_v53, %v743_v40  ;;  %v1462_v58 = vadd.f32 %v1461_v56, %v1460_v54  ;;  %1519 = vmatpush3.bf16.msra.mxu0 %v893_v52 }
 0x3af   : > { %1520 = vmatprep.subr.bf16.mxu0 %v1692_v0  ;;  %v1614_v0 = vld [vmem:[%s2040_s4 + $0x148] sm:$0xff]  }
 0x3b0   : > { %v886_v59 = vadd.f32 %v1462_v58, %v743_v40  ;;  %v891_v60 = vmax.f32 %v883_v57, 0.0 }
 0x3b2   : > { %v892_v61 = vmax.f32 %v886_v59, 0.0 }
 0x3b4   : > { %v894_v63 = vpack.c.bf16 %v892_v61, %v891_v60 }
 0x3b6   : > { %1521 = vmatpush3.bf16.msra.mxu0 %v894_v63 }
 0x3b7   : > { %1466 = vmatprep.subr.bf16.mxu0 %v1612_v62 }
 0x3b9   : > { %1523 = vmatmul.mubr.msk.bf16.vlgmr.msra.gmra.mrb[16].mxu0 %vm902_vm3, %v1611_v1 }
 0x3ba   : > { %1467 = vmatpush3.bf16.msra.mxu0 %v1613_v2 }
 0x3bb   : > { %1468 = vmatprep.subr.bf16.mxu0 %v1614_v0 }
 0x3be   : > { %1469 = vmatpush3.bf16.msra.mxu0 %v1615_v3 }
 0x3bf   : > { %1470 = vmatprep.subr.bf16.mxu0 %v1616_v4 }
 0x3c2   : > { %1471 = vmatpush3.bf16.msra.mxu0 %v1617_v5 }
 0x3c3   : > { %1472 = vmatprep.subr.bf16.mxu0 %v1618_v6 }
 0x3c6   : > { %1473 = vmatpush3.bf16.msra.mxu0 %v1619_v7 }
 0x3c7   : > { %1474 = vmatprep.subr.bf16.mxu0 %v1620_v8 }
 0x3ca   : > { %1475 = vmatpush3.bf16.msra.mxu0 %v1621_v9 }
 0x3cb   : > { %1476 = vmatprep.subr.bf16.mxu0 %v1622_v10 }
 0x3ce   : > { %1477 = vmatpush3.bf16.msra.mxu0 %v1623_v11 }
 0x3cf   : > { %1478 = vmatprep.subr.bf16.mxu0 %v1624_v12 }
 0x3d2   : > { %1479 = vmatpush3.bf16.msra.mxu0 %v1625_v13 }
 0x3d3   : > { %1480 = vmatprep.subr.bf16.mxu0 %v1626_v14 }
 0x3d6   : > { %1481 = vmatpush3.bf16.msra.mxu0 %v1627_v15 }
 0x48c   : > { %v940_v16 = vpop.f32.mrb[16].mxu0 }
 0x48d   : > { %v1524_v17 = vpop.f32.mrb[17].mxu0 }
 0x48e   : > { %v943_v18 = vpop.f32.mrb[18].mxu0 }
 0x48f   : > { %v947_v19 = vpack.c.bf16 %v943_v18, %v940_v16  ;;  %v1525_v20 = vpop.f32.mrb[19].mxu0 }
 0x491   : > { %1115 = vmatprep.mubr.bf16.mxu0 %v947_v19 }
 0x492   : > { %1116 = vmatmul.mubr.bf16.vlgmr.msra.gmra.mrb[20].mxu0 %v893_v52 }
 0x565   : > { %v1482_v22 = vpop.f32.mrb[20].mxu0 }
 0x566   : > { %v1483_v24 = vpop.f32.mrb[21].mxu0 }
 0x567   : > { %v1484_v25 = vadd.f32 %v1483_v24, %v1482_v22  ;;  %v1485_v26 = vpop.f32.mrb[22].mxu0 }
 0x568   : > { %v1486_v27 = vpop.f32.mrb[23].mxu0 }
 0x569   : > { %v1118_v28 = vadd.f32 %v1484_v25, %v986_v23  ;;  %v1487_v29 = vadd.f32 %v1486_v27, %v1485_v26 }
 0x56b   : > { %1124 = vst [vmem:[%s289_s19] sm:$0xff] %v1118_v28  ;;  %v1121_v55 = vadd.f32 %v1487_v29, %v986_v23 }
 0x56d   : > { %1125 = vst [vmem:[%s289_s19 + $0x8] sm:$0xff] %v1121_v55 }
 0x56e   : > { %1641 = shalt.err (!%p1638_p3)
}
 0x56f   : > { %s1642_s12 = scalar_lea.hbm %s1993_s28, 256  ;;  %s1646_s16 = scalar_lea.hbm %s2042_s6, 1024 }
 0x570   : > { %p1643_p4 = scmp.ne.s32.totalorder %s1993_s28, %s1642_s12  ;;  %p1647_p9 = scmp.lt.u32.totalorder %s1993_s28, %s2042_s6 }
 0x571   : > { %p1648_p10 = scmp.lt.u32.totalorder %s1646_s16, %s1642_s12  ;;  %p1650_p12 = scmp.lt.u32.totalorder %s1642_s12, %s1993_s28 }
 0x572   : > { %p1644_p7 = pnand %p1643_p4, %p1770_p5 }
 0x573   : > { %p1649_p11 = por %p1648_p10, %p1647_p9 }
 0x574   : > { %p1645_p8 = pneg %p1644_p7 }
 0x575   : > { %p1651_p13 = por %p1650_p12, %p1649_p11 }
 0x577   : > { %p1652_p0 = pnand %p1651_p13, %p1645_p8 }
 0x579   : > { %1655 = shalt.err (!%p1652_p0)
}
 0x57a   : > { %s1695_s10 = smov 128   ;;  %s1696_s17 = smov 8  }
 0x57b   : > { %1527 = dma.vmem_to_hbm [thread:$0]  (%p1770_p5), %s1988_s20, 256, %s1993_s28, %s1995_s13, %s1695_s10, %s1695_s10, %s1696_s17  }
 0x57c PF: > { %p1533_p1 = scmp.ge.s32.totalorder %s1690_s24, 2  ;;  %s1155_s26 = sand.u32 1, %s1678_s21  }
 0x57d   : > { %s1156_s29 = scalar_lea.sflag [#allocation3], %s1155_s26 }
 0x57e   : > { %p1530_p2 = pnand %p1533_p1, %p1774_p6 }
 0x580   : > { %1673 = dma.done.wait (!%p1530_p2), %s1156_s29, 256  }
 0x581   : > { %1675 = vsyncadd (!%p1530_p2), %s1156_s29, 4294967040  ;;  %p16_p3 = scmp.ge.s32.totalorder %s1757_s27, 6   ;;  %s2045_s21 = smov %s1682_s22 }
 0x582   : > { %s2046_s22 = smov %s1686_s23  ;;  %s2047_s23 = smov %s1768_s30 }
 0x583   : > { %s2048_s24 = smov %s1757_s27  ;;  %18 = sbr.rel (!%p16_p3) target bundleno = 3 (0x3), region = 92 }
 0x58a   :  { %1161 = vsyncpa [#allocation3], 1 }
 0x58b   :  { %1163 = vsyncpa [#allocation3 + $0x1], 1 }

</bundles_post_ra>
